<compile_context>
chip_gen: v7x
topology: tpu7x:2x2x1
jax: 0.10.0
libtpu: 0.0.40
codegen_flags: <defaults>
</compile_context>

<pallas_src>
import math

import jax
import jax.numpy as jnp
from jax.experimental import pallas as pl
from jax.experimental.pallas import tpu as pltpu


# ----------------------------------------------------------------------------
# Pallas kernel: out = x * cos + rotate_half(x) * sin   (pairwise rotate_half)
# ----------------------------------------------------------------------------
def _rope_kernel(x_ref, cos_ref, sin_ref, o_ref):
    x = x_ref[...].astype(jnp.float32)        # (TILE, L) — f32 compute (v5e-safe)
    c = cos_ref[...].astype(jnp.float32)      # bf16 -> f32 upcast on the VPU
    s = sin_ref[...].astype(jnp.float32)

    lanes = x.shape[-1]
    lane_id = jax.lax.broadcasted_iota(jnp.int32, (1, lanes), 1)
    is_even = (lane_id % 2) == 0

    # rotate_half on adjacent (even, odd) pairs:
    #   out[2k]   uses -x[2k+1]  -> roll by L-1 (== shift -1) brings x[i+1] to i
    #   out[2k+1] uses  x[2k]    -> roll by  1  brings x[i-1] to i
    x_next = pltpu.roll(x, shift=lanes - 1, axis=1)
    x_prev = pltpu.roll(x, shift=1, axis=1)
    x_rot = jnp.where(is_even, -x_next, x_prev)

    o_ref[...] = (x * c + x_rot * s).astype(o_ref.dtype)


# ----------------------------------------------------------------------------
# Layout / tiling helpers
# ----------------------------------------------------------------------------
def _fold_layout(hw, c):
    """Lane-dense 2-D view (rows, lanes) of an (hw, c) slab; pairs stay adjacent."""
    if c % 128 == 0:
        return hw, c                       # already lane-dense
    if c < 128 and (hw * c) % 128 == 0:
        return (hw * c) // 128, 128        # fold rows into the lane axis
    return hw, c                           # fallback (masked stores, still correct)


def _pick_row_tile(rows, lanes, budget_bytes=1 << 20):
    """Largest multiple-of-8 divisor of `rows` keeping an f32 (tile, lanes) block
    under ~1 MiB — fits default scoped VMEM with double-buffered x/out + bf16
    cos/sin on all of v5e/v6e/v7x, while staying past the pipeline knee."""
    cap = max(8, budget_bytes // (4 * lanes))
    if rows <= cap:
        return rows                        # single (full-extent) block per batch
    t = (min(cap, rows) // 8) * 8
    while t >= 8:
        if rows % t == 0:
            return t
        t -= 8
    return rows                            # no aligned divisor; one block per batch


def rope_apply(x, cos2d, sin2d):
    """x: (N, H, W, C) f32. cos2d/sin2d: (rows, lanes) bf16/f32, pre-folded."""
    n, h, w, c = x.shape
    rows, lanes = cos2d.shape
    xf = x.reshape(n, rows, lanes)         # row-major metadata-only reshape

    tile = _pick_row_tile(rows, lanes)
    grid = (n, rows // tile)

    out = pl.pallas_call(
        _rope_kernel,
        out_shape=jax.ShapeDtypeStruct((n, rows, lanes), x.dtype),
        grid=grid,
        in_specs=[
            pl.BlockSpec((pl.Squeezed(), tile, lanes), lambda b, r: (b, r, 0)),
            pl.BlockSpec((tile, lanes), lambda b, r: (r, 0)),   # cos (shared over N)
            pl.BlockSpec((tile, lanes), lambda b, r: (r, 0)),   # sin (shared over N)
        ],
        out_specs=pl.BlockSpec((pl.Squeezed(), tile, lanes), lambda b, r: (b, r, 0)),
        compiler_params=pltpu.CompilerParams(
            dimension_semantics=("parallel", "parallel")),
    )(xf, cos2d, sin2d)
    return out.reshape(n, h, w, c)


# ----------------------------------------------------------------------------
# Module: buffer construction (__init__) in plain JAX, forward via the kernel.
# ----------------------------------------------------------------------------
class RoPEPositionEncodingSine:
    def __init__(self, d_model, max_shape=(32, 32), npe=None, ropefp16=True):
        assert npe is not None
        H, W = max_shape
        half_dt = jnp.float16 if ropefp16 else jnp.float32
        # Kernel-side copies are bf16 (TPU-native narrow dtype); cast happens once.
        self._kernel_dtype = jnp.bfloat16 if ropefp16 else jnp.float32

        i_pos = jnp.cumsum(jnp.ones((H, W), jnp.float32), axis=0)[..., None]  # (H,W,1)
        j_pos = jnp.cumsum(jnp.ones((H, W), jnp.float32), axis=1)[..., None]  # (H,W,1)
        tr_h, tr_w, te_h, te_w = npe
        i_pos = i_pos * tr_h / te_h
        j_pos = j_pos * tr_w / te_w

        dq = d_model // 4
        div_term = jnp.exp(
            jnp.arange(0, dq, dtype=jnp.float32) * (-math.log(10000.0) / dq)
        )[None, None, :]                                                       # (1,1,dq)

        def build(ip, jp, h, w):
            sin = jnp.zeros((h, w, d_model // 2), half_dt)
            cos = jnp.zeros((h, w, d_model // 2), half_dt)
            sin = sin.at[:, :, 0::2].set(jnp.sin(ip * div_term).astype(half_dt))
            sin = sin.at[:, :, 1::2].set(jnp.sin(jp * div_term).astype(half_dt))
            cos = cos.at[:, :, 0::2].set(jnp.cos(ip * div_term).astype(half_dt))
            cos = cos.at[:, :, 1::2].set(jnp.cos(jp * div_term).astype(half_dt))
            sin = jnp.repeat(sin, 2, axis=-1)  # == torch repeat_interleave(2, dim=-1)
            cos = jnp.repeat(cos, 2, axis=-1)
            return sin[None], cos[None]        # (1,h,w,d_model)

        self.sin, self.cos = build(i_pos, j_pos, H, W)

        # 1/4-resolution buffers (generalized from the hard-coded 64/4 reshape;
        # identical to the PyTorch math when max_shape == (256, 256)).
        i4 = i_pos.reshape(H // 4, 4, W // 4, 4, 1)[..., 0, :]   # (H/4,4,W/4,1)
        i4 = i4.mean(axis=-3)                                    # (H/4,W/4,1)
        j4 = j_pos.reshape(H // 4, 4, W // 4, 4, 1)[:, 0, ...]   # (H/4,W/4,4,1)
        j4 = j4.mean(axis=-2)                                    # (H/4,W/4,1)
        self.sin4, self.cos4 = build(i4, j4, H // 4, W // 4)

        # Per-resolution cache of cropped, flattened, lane-folded bf16 buffers
        # (built once, so the crop/cast never burns HBM bandwidth per forward).
        self._cache = {}

    def _cropped(self, ratio, h, w):
        key = (ratio, h, w)
        if key not in self._cache:
            cos_buf, sin_buf = (self.cos4, self.sin4) if ratio == 4 else (self.cos, self.sin)
            c = cos_buf.shape[-1]
            rows, lanes = _fold_layout(h * w, c)
            cos2d = cos_buf[0, :h, :w, :].astype(self._kernel_dtype).reshape(rows, lanes)
            sin2d = sin_buf[0, :h, :w, :].astype(self._kernel_dtype).reshape(rows, lanes)
            self._cache[key] = (cos2d, sin2d)
        return self._cache[key]

    def forward(self, x, ratio=1):
        _, h, w, _ = x.shape
        cos2d, sin2d = self._cropped(ratio, h, w)
        return rope_apply(x, cos2d, sin2d)


# ----------------------------------------------------------------------------
# Pure-JAX references for correctness checking.
# ----------------------------------------------------------------------------
def _rotate_half_ref(x):
    xr = x.reshape(*x.shape[:-1], x.shape[-1] // 2, 2)
    x1, x2 = xr[..., 0], xr[..., 1]
    return jnp.stack((-x2, x1), axis=-1).reshape(x.shape)


def _forward_ref_fp16(mod, x, ratio=1):
    """Mirrors the PyTorch forward exactly (fp16 buffers upcast to f32)."""
    c, s = (mod.cos4, mod.sin4) if ratio == 4 else (mod.cos, mod.sin)
    c = c[:, : x.shape[1], : x.shape[2], :].astype(jnp.float32)
    s = s[:, : x.shape[1], : x.shape[2], :].astype(jnp.float32)
    return x * c + _rotate_half_ref(x) * s


def _forward_ref_exact(mod, x, ratio=1):
    """Same math as the kernel (uses the cached bf16 buffers) — bitwise-level ref."""
    n, h, w, c = x.shape
    cos2d, sin2d = mod._cropped(ratio, h, w)
    cf = cos2d.astype(jnp.float32).reshape(1, h, w, c)
    sf = sin2d.astype(jnp.float32).reshape(1, h, w, c)
    return x * cf + _rotate_half_ref(x) * sf


if __name__ == "__main__":
    d_model = 32
    mod = RoPEPositionEncodingSine(
        d_model, max_shape=(32, 32), npe=(32, 32, 32, 32), ropefp16=True
    )

    key = jax.random.PRNGKey(0)
    k1, k2 = jax.random.split(key)
    x = jax.random.normal(k1, (2, 16, 16, d_model), dtype=jnp.float32)
    x4 = jax.random.normal(k2, (2, 8, 8, d_model), dtype=jnp.float32)

    out = jax.block_until_ready(mod.forward(x, ratio=1))
    out4 = jax.block_until_ready(mod.forward(x4, ratio=4))

    assert out.shape == x.shape and out.dtype == jnp.float32
    assert out4.shape == x4.shape and out4.dtype == jnp.float32

    # Exact check against the same bf16 buffers the kernel reads.
    assert jnp.allclose(out, _forward_ref_exact(mod, x, ratio=1), atol=1e-5, rtol=1e-5)
    assert jnp.allclose(out4, _forward_ref_exact(mod, x4, ratio=4), atol=1e-5, rtol=1e-5)

    # Semantics check against the PyTorch-style fp16-buffer forward
    # (bf16 vs fp16 cos/sin storage -> ~1e-2 level differences, as expected).
    assert jnp.allclose(out, _forward_ref_fp16(mod, x, ratio=1), atol=5e-2, rtol=0)
    assert jnp.allclose(out4, _forward_ref_fp16(mod, x4, ratio=4), atol=5e-2, rtol=0)

    print("KERNEL_OK")
</pallas_src>

<mosaic_0001>
module attributes {stable_mosaic.version = 11 : i64} {
  func.func @_rope_kernel(%arg0: i32, %arg1: i32, %arg2: memref<1x64x128xf32, #tpu.memory_space<vmem>>, %arg3: memref<64x128xbf16, #tpu.memory_space<vmem>>, %arg4: memref<64x128xbf16, #tpu.memory_space<vmem>>, %arg5: memref<1x64x128xf32, #tpu.memory_space<vmem>>) attributes {dimension_semantics = [#tpu.dimension_semantics<parallel>, #tpu.dimension_semantics<parallel>], iteration_bounds = array<i64: 2, 1>, scalar_prefetch = 0 : i64, scratch_operands = 0 : i64, tpu.core_type = #tpu.core_type<tc>, window_params = [{transform_indices = @transform_0, window_bounds = array<i64: 1, 64, 128>}, {transform_indices = @transform_1, window_bounds = array<i64: 64, 128>}, {transform_indices = @transform_2, window_bounds = array<i64: 64, 128>}, {transform_indices = @transform_3, window_bounds = array<i64: 1, 64, 128>}]} {
    %c0 = arith.constant 0 : index
    %c0_0 = arith.constant 0 : index
    %c0_1 = arith.constant 0 : index
    %0 = vector.load %arg2[%c0, %c0_0, %c0_1] : memref<1x64x128xf32, #tpu.memory_space<vmem>>, vector<1x64x128xf32>
    %1 = vector.shape_cast %0 : vector<1x64x128xf32> to vector<64x128xf32>
    %c0_2 = arith.constant 0 : index
    %c0_3 = arith.constant 0 : index
    %2 = vector.load %arg3[%c0_2, %c0_3] : memref<64x128xbf16, #tpu.memory_space<vmem>>, vector<64x128xbf16>
    %3 = arith.extf %2 : vector<64x128xbf16> to vector<64x128xf32>
    %c0_4 = arith.constant 0 : index
    %c0_5 = arith.constant 0 : index
    %4 = vector.load %arg4[%c0_4, %c0_5] : memref<64x128xbf16, #tpu.memory_space<vmem>>, vector<64x128xbf16>
    %5 = arith.extf %4 : vector<64x128xbf16> to vector<64x128xf32>
    %6 = tpu.iota {dimensions = array<i32: 1>} : vector<1x128xi32>
    %c2_i32 = arith.constant 2 : i32
    %c0_i32 = arith.constant 0 : i32
    %7 = arith.cmpi eq, %c2_i32, %c0_i32 : i32
    %c1_i32 = arith.constant 1 : i32
    %8 = arith.select %7, %c1_i32, %c2_i32 : i32
    %9 = vector.broadcast %8 : i32 to vector<1x128xi32>
    %10 = arith.remsi %6, %9 : vector<1x128xi32>
    %c0_i32_6 = arith.constant 0 : i32
    %11 = vector.broadcast %c0_i32_6 : i32 to vector<1x128xi32>
    %12 = arith.cmpi ne, %10, %11 : vector<1x128xi32>
    %c0_i32_7 = arith.constant 0 : i32
    %13 = vector.broadcast %c0_i32_7 : i32 to vector<1x128xi32>
    %14 = arith.cmpi slt, %10, %13 : vector<1x128xi32>
    %c0_i32_8 = arith.constant 0 : i32
    %15 = arith.cmpi slt, %8, %c0_i32_8 : i32
    %16 = vector.broadcast %15 : i1 to vector<1x128xi1>
    %17 = vector.broadcast %16 : vector<1x128xi1> to vector<1x128xi1>
    %18 = arith.xori %14, %17 : vector<1x128xi1>
    %19 = arith.andi %18, %12 : vector<1x128xi1>
    %20 = vector.broadcast %8 : i32 to vector<1x128xi32>
    %21 = arith.addi %10, %20 : vector<1x128xi32>
    %22 = arith.select %19, %21, %10 : vector<1x128xi1>, vector<1x128xi32>
    %c0_i32_9 = arith.constant 0 : i32
    %23 = vector.broadcast %c0_i32_9 : i32 to vector<1x128xi32>
    %24 = arith.cmpi eq, %22, %23 : vector<1x128xi32>
    %c127_i32 = arith.constant 127 : i32
    %25 = tpu.dynamic_rotate %1 by %c127_i32 dim 1 : vector<64x128xf32>, i32 -> vector<64x128xf32>
    %c1_i32_10 = arith.constant 1 : i32
    %26 = tpu.dynamic_rotate %1 by %c1_i32_10 dim 1 : vector<64x128xf32>, i32 -> vector<64x128xf32>
    %cst = arith.constant 0.000000e+00 : f32
    %27 = vector.broadcast %cst : f32 to vector<64x128xf32>
    %28 = arith.subf %27, %25 : vector<64x128xf32>
    %29 = vector.shape_cast %24 : vector<1x128xi1> to vector<1x128xi1>
    %30 = vector.broadcast %29 : vector<1x128xi1> to vector<64x128xi1>
    %31 = arith.select %30, %28, %26 : vector<64x128xi1>, vector<64x128xf32>
    %32 = arith.mulf %1, %3 : vector<64x128xf32>
    %33 = arith.mulf %31, %5 : vector<64x128xf32>
    %34 = arith.addf %32, %33 : vector<64x128xf32>
    %c0_11 = arith.constant 0 : index
    %c0_12 = arith.constant 0 : index
    %c0_13 = arith.constant 0 : index
    %35 = vector.load %arg5[%c0_11, %c0_12, %c0_13] : memref<1x64x128xf32, #tpu.memory_space<vmem>>, vector<1x64x128xf32>
    %36 = vector.shape_cast %35 : vector<1x64x128xf32> to vector<64x128xf32>
    %37 = vector.shape_cast %34 : vector<64x128xf32> to vector<1x64x128xf32>
    tpu.vector_store %arg5[%c0_11, %c0_12, %c0_13], %37 {strides = array<i32>} : memref<1x64x128xf32, #tpu.memory_space<vmem>>, vector<1x64x128xf32>,
    return
  }
  func.func @transform_0(%arg0: i32, %arg1: i32) -> (i32, i32, i32) {
    %c0_i32 = arith.constant 0 : i32
    %c0_i32_0 = arith.constant 0 : i32
    return %arg0, %arg1, %c0_i32 : i32, i32, i32
  }
  func.func @transform_1(%arg0: i32, %arg1: i32) -> (i32, i32) {
    %c0_i32 = arith.constant 0 : i32
    %c0_i32_0 = arith.constant 0 : i32
    return %arg1, %c0_i32 : i32, i32
  }
  func.func @transform_2(%arg0: i32, %arg1: i32) -> (i32, i32) {
    %c0_i32 = arith.constant 0 : i32
    %c0_i32_0 = arith.constant 0 : i32
    return %arg1, %c0_i32 : i32, i32
  }
  func.func @transform_3(%arg0: i32, %arg1: i32) -> (i32, i32, i32) {
    %c0_i32 = arith.constant 0 : i32
    %c0_i32_0 = arith.constant 0 : i32
    return %arg0, %arg1, %c0_i32 : i32, i32, i32
  }
}

</mosaic_0001>

<bundles_post_ra>
// kernel: tpu_custom_call.1
= control target key start
LH: loop header
LB: loop body
LE: loop exit
PB: predicated region body
PF: predicated region fallthrough
CT: control target
= control target key end

     0   :  { %8 = vsyncpa [#allocation3], 0  ;;  %s1197_s0 = inlined_call_operand.hbm [shape: f32[2,64,128], index: 0, kind: input, shape index: {}]   ;;  %s1198_s1 = inlined_call_operand.hbm [shape: bf16[64,128], index: 1, kind: input, shape index: {}]   ;;  %s1199_s2 = inlined_call_operand.hbm [shape: bf16[64,128], index: 2, kind: input, shape index: {}]   ;;  %s1200_s3 = inlined_call_operand.hbm [shape: f32[2,64,128], index: 3, kind: output, shape index: {}]  }
   0x1   :  { %10 = vsyncpa [#allocation3 + $0x1], 0 }
   0x2   :  { %11 = vsyncpa [#allocation6], 0 }
   0x3   :  { %12 = vsyncpa [#allocation4], 0 }
   0x4   :  { %14 = vsyncpa [#allocation4 + $0x1], 0  ;;  %s875_s12 = smov 0   ;;  %s877_s13 = smov 0  }
   0x5   :  { %s879_s14 = smov 0   ;;  %s881_s15 = smov 0  }
   0x6   :  { %s883_s16 = smov 0   ;;  %s885_s17 = smov 0  }
   0x7 LB: > { %s519_s18 = sadd.s32 4294967295, %s841_s17   ;;  %s520_s19 = sadd.s32 4294967294, %s841_s17   ;;  %s841_s17 = sphi %s885_s17, %s20_s17   ;;  %s837_s16 = sphi %s883_s16, %s1224_s16   ;;  %s833_s15 = sphi %s881_s15, %s1223_s15   ;;  %s829_s14 = sphi %s879_s14, %s1222_s14   ;;  %s825_s13 = sphi %s877_s13, %s1221_s13   ;;  %s821_s12 = sphi %s875_s12, %s1220_s12  }
   0x8   : > { %p54_p0 = scmp.ne.s32.totalorder %s825_s13, %s821_s12  ;;  %p909_p1 = scmp.eq.s32.totalorder %s519_s18, 0 }
   0x9   : > { %p913_p2 = scmp.eq.s32.totalorder %s519_s18, 1  ;;  %p138_p3 = scmp.eq.s32.totalorder %s520_s19, 1 }
   0xa   : > { %s1205_s20 = scalar_select %p909_p1, 1, 0 }
   0xb   : > { %p919_p4 = por %p909_p1, %p54_p0  ;;  %p521_p5 = scmp.ge.s32.totalorder %s841_s17, 1 }
   0xc   : > { %p924_p6 = por %p138_p3, %p54_p0  ;;  %p145_p7 = scmp.lt.s32.totalorder %s841_s17, 3 }
   0xd   : > { %s1207_s22 = scalar_select %p919_p4, 1, 0 }
   0xe   : > { %s1208_s23 = scalar_select %p924_p6, 1, 0 }
   0xf   : > { %p929_p8 = pnand %p521_p5, %p145_p7  ;;  %s843_s25 = smov [#allocation5]  }
  0x10   : > { %s160_s26 = sshll.u32 %s843_s25, 4  ;;  %s844_s28 = smov [#allocation7]   ;;  %s933_s26 = int_to_ptr.vmem [resolvable:$true] %s160_s26 }
  0x11   : > { %p590_p9 = pneg %p929_p8  ;;  %s176_s29 = sshll.u32 %s844_s28, 4  ;;  %s944_s29 = int_to_ptr.vmem [resolvable:$true] %s176_s29 }
  0x12   : > { %s669_s5 = scalar_lea.hbm %s1198_s1, 512 }
  0x13   : > { %p940_p11 = pnand %p590_p9, %p909_p1  ;;  %p670_p12 = scmp.ne.s32.totalorder %s1198_s1, %s669_s5 }
  0x14   : > { %p676_p5 = scmp.lt.u32.totalorder %s669_s5, %s1198_s1 }
  0x15   : > { %p671_p13 = pneg %p940_p11 }
  0x17   : > { %p672_p0 = pnand %p671_p13, %p670_p12 }
  0x19   : > { %p673_p3 = pneg %p672_p0 }
  0x1b   : > { %p678_p7 = pnand %p676_p5, %p673_p3 }
  0x1d   : > { %681 = shalt.err (!%p678_p7)
}
  0x1e   : > { %s682_s10 = scalar_lea.vmem %s933_s26, 512  ;;  %p690_p1 = scmp.lt.s32.totalorder %s933_s26, %s933_s26 }
  0x1f   : > { %p683_p9 = scmp.ne.s32.totalorder %s933_s26, %s682_s10  ;;  %p691_p12 = scmp.lt.s32.totalorder %s682_s10, %s682_s10 }
  0x21   : > { %p685_p10 = pnand %p683_p9, %p671_p13  ;;  %p692_p0 = por %p691_p12, %p690_p1 }
  0x23   : > { %p686_p6 = pneg %p685_p10 }
  0x25   : > { %p693_p4 = pnand %p692_p0, %p686_p6 }
  0x27   : > { %696 = shalt.err (!%p693_p4)
}
  0x28   : > { %s845_s11 = smov 64   ;;  %s846_s18 = smov 4  }
  0x29   : > { %593 = dma.hbm_to_vmem [thread:$0]  (!%p940_p11), %s1198_s1, 512, %s933_s26, [#allocation6], %s845_s11, %s845_s11, %s846_s18  }
  0x2a   : > { %s697_s4 = scalar_lea.hbm %s1199_s2, 512 }
  0x2b   : > { %p698_p1 = scmp.ne.s32.totalorder %s1199_s2, %s697_s4  ;;  %p704_p10 = scmp.lt.u32.totalorder %s697_s4, %s1199_s2 }
  0x2d   : > { %p700_p4 = pnand %p698_p1, %p671_p13 }
  0x2f   : > { %p701_p6 = pneg %p700_p4 }
  0x31   : > { %p706_p3 = pnand %p704_p10, %p701_p6 }
  0x33   : > { %709 = shalt.err (!%p706_p3)
}
  0x34   : > { %s710_s26 = scalar_lea.vmem %s944_s29, 512  ;;  %p718_p12 = scmp.lt.s32.totalorder %s944_s29, %s944_s29 }
  0x35   : > { %p711_p5 = scmp.ne.s32.totalorder %s944_s29, %s710_s26  ;;  %p719_p0 = scmp.lt.s32.totalorder %s710_s26, %s710_s26 }
  0x37   : > { %p713_p7 = pnand %p711_p5, %p671_p13  ;;  %p720_p1 = por %p719_p0, %p718_p12 }
  0x39   : > { %p714_p9 = pneg %p713_p7 }
  0x3b   : > { %p721_p4 = pnand %p720_p1, %p714_p9 }
  0x3d   : > { %724 = shalt.err (!%p721_p4)
}
  0x3e   : > { %596 = dma.hbm_to_vmem [thread:$0]  (!%p940_p11), %s1199_s2, 512, %s944_s29, [#allocation6], %s845_s11, %s845_s11, %s846_s18  }
  0x3f   : > { %s32_s19 = sadd.s32 1, %s837_s16  ;;  %s41_s25 = sadd.s32 1, %s829_s14 }
  0x40   : > { %p34_p13 = scmp.ge.s32.totalorder %s32_s19, 2  ;;  %p48_p6 = scmp.ne.s32.totalorder %s829_s14, %s825_s13 }
  0x41   : > { %p49_p10 = scmp.eq.s32.totalorder %s841_s17, 0  ;;  %p607_p3 = scmp.lt.s32.totalorder %s841_s17, 2 }
  0x42   : > { %s1226_s19 = smov (%p34_p13, %s32_s19), 0  ;;  %p1008_p7 = por %p913_p2, %p48_p6 }
  0x43   : > { %p50_p5 = por %p49_p10, %p48_p6  ;;  %s36_s28 = ssub.s32 %s837_s16, %s1226_s19 }
  0x44   : > { %s1211_s27 = scalar_select %p1008_p7, 1, 0 }
  0x45   : > { %s190_s30 = sand.u32 1, %s829_s14   ;;  %p39_p9 = scmp.eq.s32.totalorder %s36_s28, 0 }
  0x46   : > { %s525_s29 = sshll.u32 %s190_s30, 6  ;;  %s538_s11 = sshll.u32 %s837_s16, 10 }
  0x47   : > { %s1017_s18 = scalar_select %p39_p9, %s829_s14, %s41_s25  }
  0x48   : > { %s1022_s6 = scalar_lea.hbm %s1197_s0, %s538_s11  ;;  %s194_s21 = scalar_lea.vmem [#allocation2], %s525_s29 }
  0x49   : > { %s203_s7 = sshll.u32 %s194_s21, 4  ;;  %p1026_p2 = pnand %p607_p3, %p50_p5  ;;  %s1030_s7 = int_to_ptr.vmem [resolvable:$true] %s203_s7 }
  0x4a   : > { %s1032_s26 = scalar_lea.sflag [#allocation3], %s190_s30  ;;  %s725_s9 = scalar_lea.hbm %s1022_s6, 1024 }
  0x4b   : > { %p726_p11 = scmp.ne.s32.totalorder %s1022_s6, %s725_s9  ;;  %p727_p12 = pneg %p1026_p2 }
  0x4c   : > { %s730_s28 = scalar_lea.hbm %s1197_s0, 2048  ;;  %p731_p4 = scmp.lt.u32.totalorder %s1022_s6, %s1197_s0 }
  0x4d   : > { %p728_p0 = pnand %p727_p12, %p726_p11  ;;  %p732_p13 = scmp.lt.u32.totalorder %s730_s28, %s725_s9 }
  0x4e   : > { %p734_p10 = scmp.lt.u32.totalorder %s725_s9, %s1022_s6 }
  0x4f   : > { %p729_p1 = pneg %p728_p0  ;;  %p733_p6 = por %p732_p13, %p731_p4 }
  0x51   : > { %p735_p3 = por %p734_p10, %p733_p6 }
  0x53   : > { %p736_p5 = pnand %p735_p3, %p729_p1 }
  0x55   : > { %739 = shalt.err (!%p736_p5)
}
  0x56   : > { %s740_s30 = scalar_lea.vmem %s1030_s7, 1024  ;;  %s847_s4 = smov [#allocation2]  }
  0x57   : > { %p741_p9 = scmp.ne.s32.totalorder %s1030_s7, %s740_s30  ;;  %s745_s5 = sshll.u32 %s847_s4, 4  ;;  %s746_s5 = int_to_ptr.vmem [resolvable:$false] %s745_s5 }
  0x58   : > { %s747_s21 = scalar_lea.vmem %s746_s5, 2048  ;;  %p748_p7 = scmp.lt.s32.totalorder %s1030_s7, %s746_s5 }
  0x59   : > { %p743_p11 = pnand %p741_p9, %p727_p12  ;;  %p749_p4 = scmp.lt.s32.totalorder %s747_s21, %s740_s30 }
  0x5b   : > { %p744_p0 = pneg %p743_p11  ;;  %p750_p13 = por %p749_p4, %p748_p7 }
  0x5d   : > { %p751_p6 = pnand %p750_p13, %p744_p0 }
  0x5f   : > { %754 = shalt.err (!%p751_p6)
}
  0x60   : > { %s848_s9 = smov 128   ;;  %s849_s10 = smov 8  }
  0x61   : > { %600 = dma.hbm_to_vmem [thread:$0]  (!%p1026_p2), %s1022_s6, 1024, %s1030_s7, %s1032_s26, %s848_s9, %s848_s9, %s849_s10  }
  0x62   : > { %215 = sbr.rel (%p929_p8) target bundleno = 273 (0x111), region = 32  ;;  %s1063_s25 = sand.u32 (!%p929_p8), 1, %s825_s13  }
  0x63   : > { %s529_s28 = sshll.u32 (!%p929_p8), %s1063_s25, 6  ;;  %s218_s29 = scalar_lea.sflag (!%p929_p8), [#allocation3], %s1063_s25 }
  0x64   : > { %s221_s11 = scalar_lea.vmem (!%p929_p8), [#allocation2], %s529_s28  ;;  %p1213_p7 = scmp.ne.s32.totalorder (!%p929_p8), %s1207_s22, 0 }
  0x69   : > { %808 = dma.done.wait (%p1213_p7), %s218_s29, 1024  }
  0x6a   : > { %810 = vsyncadd (%p1213_p7), %s218_s29, 4294966272  ;;  %p1214_p2 = scmp.ne.s32.totalorder %s1205_s20, 0 }
  0x6c   : > { %812 = dma.done.wait (%p1214_p2), [#allocation6], 1024  }
  0x6d   : > { %814 = vsyncadd (%p1214_p2), [#allocation6], 4294966272  ;;  %v258_v0 = vld [vmem:[%s221_s11 + $0x10] sm:$0xff]  ;;  %v256_v1 = vld [vmem:[%s221_s11] sm:$0xff]  ;;  %s850_s24 = smov 127   ;;  %s851_s20 = smov 1   ;;  %v296_v10 = vlaneseq }
  0x6e   : > { %315 = vrot.lane.b32.xlu1 %v258_v0, %s850_s24  ;;  %311 = vrot.lane.b32.xlu0 %v256_v1, %s850_s24  ;;  %v259_v2 = vld [vmem:[%s221_s11 + $0x18] sm:$0xff]  ;;  %v257_v3 = vld [vmem:[%s221_s11 + $0x8] sm:$0xff]  ;;  %v541_v16 = vld [vmem:[#allocation5] sm:$0xff]   ;;  %s1115_s22 = scalar_lea.vmem [#allocation8], %s529_s28  ;;  %s539_s6 = sshll.u32 %s833_s15, 10 }
  0x6f   : > { %v1077_v4 = vld [vmem:[%s221_s11 + $0x28] sm:$0xff]  ;;  %v1079_v5 = vld [vmem:[%s221_s11 + $0x20] sm:$0xff]  ;;  %v1083_v6 = vld [vmem:[%s221_s11 + $0x38] sm:$0xff]  ;;  %v297_v13 = vand.u32 127, %v296_v10  ;;  %v542_v20 = vunpack.c.l.bf16 %v541_v16  ;;  %v543_v21 = vunpack.c.h.bf16 %v541_v16  ;;  %s409_s7 = sshll.u32 %s1115_s22, 4  ;;  %s1144_s30 = scalar_lea.hbm %s1200_s3, %s539_s6  ;;  %s1146_s7 = int_to_ptr.vmem [resolvable:$true] %s409_s7 }
  0x70   : > { %v1085_v7 = vld [vmem:[%s221_s11 + $0x30] sm:$0xff]  ;;  %v557_v18 = vld [vmem:[#allocation7] sm:$0xff]   ;;  %v572_v19 = vld [vmem:[#allocation5 + $0x8] sm:$0xff]   ;;  %s394_s15 = scalar_lea.sflag [#allocation4], %s1063_s25  ;;  %s755_s4 = scalar_lea.vmem %s1146_s7, 1024 }
  0x71   : > { %v302_v17 = vand.u32 1, %v297_v13  ;;  %v559_v24 = vunpack.c.h.bf16 %v557_v18  ;;  %v558_v26 = vunpack.c.l.bf16 %v557_v18  ;;  %v546_v27 = vunpack.c.l.bf16 %v572_v19  ;;  %v575_v31 = vld [vmem:[#allocation7 + $0x8] sm:$0xff]   ;;  %v573_v36 = vld [vmem:[#allocation5 + $0x10] sm:$0xff]   ;;  %v574_v50 = vld [vmem:[#allocation5 + $0x18] sm:$0xff]   ;;  %p756_p8 = scmp.ne.s32.totalorder %s1146_s7, %s755_s4  ;;  %p1217_p12 = scmp.ne.s32.totalorder %s1211_s27, 0 }
  0x72   : > { %317 = vrot.lane.b32.xlu1 %v259_v2, %s850_s24  ;;  %313 = vrot.lane.b32.xlu0 %v257_v3, %s850_s24  ;;  %v547_v28 = vunpack.c.h.bf16 %v572_v19  ;;  %v361_v32 = vmul.f32 %v542_v20, %v256_v1  ;;  %v362_v33 = vmul.f32 %v543_v21, %v257_v3  ;;  %v563_v41 = vunpack.c.h.bf16 %v575_v31  ;;  %v576_v47 = vld [vmem:[#allocation7 + $0x10] sm:$0xff]   ;;  %s852_s5 = smov [#allocation8]  }
  0x73   : > { %vm1101_vm0 = vcmp.eq.s32.totalorder %v302_v17, 0  ;;  %v562_v42 = vunpack.c.l.bf16 %v575_v31  ;;  %v363_v43 = vmul.f32 %v546_v27, %v258_v0  ;;  %v551_v48 = vunpack.c.h.bf16 %v573_v36  ;;  %p757_p1 = pnand %p756_p8, %p1217_p12  ;;  %s759_s21 = sshll.u32 %s852_s5, 4  ;;  %s760_s21 = int_to_ptr.vmem [resolvable:$false] %s759_s21 }
  0x74   : > { %v364_v44 = vmul.f32 %v547_v28, %v259_v2  ;;  %v550_v49 = vunpack.c.l.bf16 %v573_v36  ;;  %v567_v59 = vunpack.c.h.bf16 %v576_v47  ;;  %v566_v60 = vunpack.c.l.bf16 %v576_v47  ;;  %s761_s9 = scalar_lea.vmem %s760_s21, 2048  ;;  %p762_p3 = scmp.lt.s32.totalorder %s1146_s7, %s760_s21 }
  0x75   : > { %v555_v61 = vunpack.c.h.bf16 %v574_v50  ;;  %v554_v62 = vunpack.c.l.bf16 %v574_v50  ;;  %p758_p10 = pneg %p757_p1  ;;  %p763_p5 = scmp.lt.s32.totalorder %s761_s9, %s755_s4 }
  0x76   : > { %321 = vrot.lane.b32.xlu1 %v1077_v4, %s850_s24  ;;  %319 = vrot.lane.b32.xlu0 %v1079_v5, %s850_s24 }
  0x77   : > { %v368_v18 = vmul.f32 %v555_v61, %v1083_v6  ;;  %v367_v19 = vmul.f32 %v554_v62, %v1085_v7  ;;  %p764_p9 = por %p763_p5, %p762_p3 }
  0x79   : > { %p765_p11 = pnand %p764_p9, %p758_p10 }
  0x7a   : > { %325 = vrot.lane.b32.xlu1 %v1083_v6, %s850_s24  ;;  %323 = vrot.lane.b32.xlu0 %v1085_v7, %s850_s24 }
  0x7e   : > { %329 = vrot.lane.b32.xlu1 %v257_v3, %s851_s20  ;;  %327 = vrot.lane.b32.xlu0 %v256_v1, %s851_s20  ;;  %v577_v1 = vld [vmem:[#allocation7 + $0x18] sm:$0xff]   ;;  %v365_v3 = vmul.f32 %v550_v49, %v1079_v5 }
  0x82   : > { %333 = vrot.lane.b32.xlu1 %v259_v2, %s851_s20  ;;  %331 = vrot.lane.b32.xlu0 %v258_v0, %s851_s20  ;;  %v366_v2 = vmul.f32 %v551_v48, %v1077_v4 }
  0x86   : > { %337 = vrot.lane.b32.xlu1 %v1077_v4, %s851_s20  ;;  %335 = vrot.lane.b32.xlu0 %v1079_v5, %s851_s20  ;;  %v571_v4 = vunpack.c.h.bf16 %v577_v1  ;;  %v570_v5 = vunpack.c.l.bf16 %v577_v1 }
  0x8a   : > { %341 = vrot.lane.b32.xlu1 %v1083_v6, %s851_s20  ;;  %339 = vrot.lane.b32.xlu0 %v1085_v7, %s851_s20 }
  0xe0   : > { %v316_v8 = vpop.permute.xlu1 %315  ;;  %v312_v9 = vpop.permute.xlu0 %311 }
  0xe1   : > { %v343_v29 = vsub.f32 0.0, %v312_v9  ;;  %v345_v45 = vsub.f32 0.0, %v316_v8 }
  0xe4   : > { %v318_v11 = vpop.permute.xlu1 %317  ;;  %v314_v12 = vpop.permute.xlu0 %313 }
  0xe5   : > { %v344_v30 = vsub.f32 0.0, %v314_v12  ;;  %v346_v46 = vsub.f32 0.0, %v318_v11 }
  0xe8   : > { %v1093_v14 = vpop.permute.xlu1 %321  ;;  %v1095_v15 = vpop.permute.xlu0 %319 }
  0xe9   : > { %v348_v63 = vsub.f32 0.0, %v1093_v14  ;;  %v347_v0 = vsub.f32 0.0, %v1095_v15 }
  0xec   : > { %v1097_v22 = vpop.permute.xlu1 %325  ;;  %v1099_v23 = vpop.permute.xlu0 %323 }
  0xed   : > { %v350_v16 = vsub.f32 0.0, %v1097_v22  ;;  %v349_v17 = vsub.f32 0.0, %v1099_v23 }
  0xf0   : > { %v330_v34 = vpop.permute.xlu1 %329  ;;  %v328_v35 = vpop.permute.xlu0 %327 }
  0xf1   : > { %v354_v37 = vsel %vm1101_vm0, %v344_v30, %v330_v34  ;;  %v353_v38 = vsel %vm1101_vm0, %v343_v29, %v328_v35 }
  0xf2   : > { %v370_v39 = vmul.f32 %v559_v24, %v354_v37  ;;  %v369_v40 = vmul.f32 %v558_v26, %v353_v38 }
  0xf4   : > { %v378_v51 = vadd.f32 %v370_v39, %v362_v33  ;;  %v377_v52 = vadd.f32 %v369_v40, %v361_v32  ;;  %v334_v53 = vpop.permute.xlu1 %333  ;;  %v332_v54 = vpop.permute.xlu0 %331 }
  0xf5   : > { %v356_v55 = vsel %vm1101_vm0, %v346_v46, %v334_v53  ;;  %v355_v56 = vsel %vm1101_vm0, %v345_v45, %v332_v54 }
  0xf6   : > { %386 = vst [vmem:[%s1115_s22 + $0x8] sm:$0xff] %v378_v51  ;;  %385 = vst [vmem:[%s1115_s22] sm:$0xff] %v377_v52  ;;  %v372_v57 = vmul.f32 %v563_v41, %v356_v55  ;;  %v371_v58 = vmul.f32 %v562_v42, %v355_v56 }
  0xf8   : > { %v380_v8 = vadd.f32 %v372_v57, %v364_v44  ;;  %v379_v9 = vadd.f32 %v371_v58, %v363_v43  ;;  %v338_v10 = vpop.permute.xlu1 %337  ;;  %v336_v11 = vpop.permute.xlu0 %335 }
  0xf9   : > { %v358_v12 = vsel %vm1101_vm0, %v348_v63, %v338_v10  ;;  %v357_v13 = vsel %vm1101_vm0, %v347_v0, %v336_v11 }
  0xfa   : > { %388 = vst [vmem:[%s1115_s22 + $0x18] sm:$0xff] %v380_v8  ;;  %387 = vst [vmem:[%s1115_s22 + $0x10] sm:$0xff] %v379_v9  ;;  %v374_v14 = vmul.f32 %v567_v59, %v358_v12  ;;  %v373_v15 = vmul.f32 %v566_v60, %v357_v13 }
  0xfc   : > { %v382_v20 = vadd.f32 %v374_v14, %v366_v2  ;;  %v381_v21 = vadd.f32 %v373_v15, %v365_v3  ;;  %v342_v24 = vpop.permute.xlu1 %341  ;;  %v340_v26 = vpop.permute.xlu0 %339 }
  0xfd   : > { %v360_v27 = vsel %vm1101_vm0, %v350_v16, %v342_v24  ;;  %v359_v22 = vsel %vm1101_vm0, %v349_v17, %v340_v26 }
  0xfe   : > { %390 = vst [vmem:[%s1115_s22 + $0x28] sm:$0xff] %v382_v20  ;;  %389 = vst [vmem:[%s1115_s22 + $0x20] sm:$0xff] %v381_v21  ;;  %v376_v6 = vmul.f32 %v571_v4, %v360_v27  ;;  %v375_v7 = vmul.f32 %v570_v5, %v359_v22 }
 0x100   : > { %v384_v23 = vadd.f32 %v376_v6, %v368_v18  ;;  %v383_v28 = vadd.f32 %v375_v7, %v367_v19 }
 0x102   : > { %392 = vst [vmem:[%s1115_s22 + $0x38] sm:$0xff] %v384_v23  ;;  %391 = vst [vmem:[%s1115_s22 + $0x30] sm:$0xff] %v383_v28 }
 0x103   : > { %768 = shalt.err (!%p765_p11)
}
 0x104   : > { %s769_s10 = scalar_lea.hbm %s1144_s30, 1024  ;;  %s773_s11 = scalar_lea.hbm %s1200_s3, 2048 }
 0x105   : > { %p770_p0 = scmp.ne.s32.totalorder %s1144_s30, %s769_s10  ;;  %p774_p6 = scmp.lt.u32.totalorder %s1144_s30, %s1200_s3 }
 0x106   : > { %p775_p7 = scmp.lt.u32.totalorder %s773_s11, %s769_s10  ;;  %p777_p8 = scmp.lt.u32.totalorder %s769_s10, %s1144_s30 }
 0x107   : > { %p771_p4 = pnand %p770_p0, %p1217_p12 }
 0x108   : > { %p776_p2 = por %p775_p7, %p774_p6 }
 0x109   : > { %p772_p13 = pneg %p771_p4 }
 0x10a   : > { %p778_p1 = por %p777_p8, %p776_p2 }
 0x10c   : > { %p779_p10 = pnand %p778_p1, %p772_p13 }
 0x10e   : > { %782 = shalt.err (!%p779_p10)
}
 0x10f   : > { %s853_s22 = smov 128   ;;  %s854_s6 = smov 8  }
 0x110   : > { %588 = dma.vmem_to_hbm [thread:$0]  (%p1217_p12), %s1146_s7, 1024, %s1144_s30, %s394_s15, %s853_s22, %s853_s22, %s854_s6  }
 0x111 PF: > { %s424_s8 = sand.u32 1, %s821_s12   ;;  %p1218_p3 = scmp.ne.s32.totalorder %s1208_s23, 0 }
 0x112   : > { %p1219_p5 = scmp.ge.s32.totalorder %s841_s17, 2  ;;  %s425_s26 = scalar_lea.sflag [#allocation4], %s424_s8 }
 0x114   : > { %p602_p9 = pnand %p1219_p5, %p1218_p3 }
 0x116   : > { %816 = dma.done.wait (!%p602_p9), %s425_s26, 1024  }
 0x117   : > { %818 = vsyncadd (!%p602_p9), %s425_s26, 4294966272  ;;  %s20_s17 = sadd.s32 1, %s841_s17   ;;  %s1220_s12 = smov %s825_s13 }
 0x118   : > { %p17_p11 = scmp.ge.s32.totalorder %s20_s17, 4   ;;  %s1221_s13 = smov %s829_s14 }
 0x119   : > { %s1222_s14 = smov %s1017_s18  ;;  %s1223_s15 = smov %s837_s16 }
 0x11a   : > { %s1224_s16 = smov %s1226_s19  ;;  %19 = sbr.rel (!%p17_p11) target bundleno = 7 (0x7), region = 87 }
 0x121   :  { %430 = vsyncpa [#allocation3], 1 }
 0x122   :  { %432 = vsyncpa [#allocation3 + $0x1], 1 }
 0x123   :  { %433 = vsyncpa [#allocation6], 1 }
 0x124   :  { %434 = vsyncpa [#allocation4], 1 }
 0x125   :  { %436 = vsyncpa [#allocation4 + $0x1], 1 }

</bundles_post_ra>
